<compile_context>
chip_gen: v6e
topology: v6e:2x2x1
jax: 0.10.0
libtpu: 0.0.40
codegen_flags: <defaults>
</compile_context>

<pallas_src>
import jax
import jax.numpy as jnp
from jax.experimental import pallas as pl
from jax.experimental.pallas import tpu as pltpu

_LANES = 128
_SUBLANES = 8  # f32 sublane tiling


def _model_kernel(x_ref, o_ref):
    x = x_ref[...]
    v1 = x + x                                   # 2*x
    v4 = jnp.clip(v1 + 3.0, 0.0, 6.0)            # clamp_min then clamp_max
    v6 = (v1 * v4) / 6.0
    o_ref[...] = jnp.clip(v6, 0.0, 6.0).astype(o_ref.dtype)   # ReLU6


def _round_up(n, m):
    return ((n + m - 1) // m) * m


def _tpu_generation_params():
    """Return (max_tile_rows, vmem_limit_bytes_or_None, num_tensorcores).

    max_tile_rows is rows of 128-lane f32, i.e. tile bytes = rows * 512.
      v5e default: 2048 rows = 1 MiB tile  (<= 4 MiB double-buffered in+out,
                    safely under the 16 MiB scoped default)
      v6e:         4096 rows = 2 MiB tile
      v7x:         8192 rows = 4 MiB tile, 2 TensorCores
    """
    max_rows, vmem_limit, n_tc = 2048, None, 1
    try:
        kind = getattr(jax.devices()[0], "device_kind", "") or ""
        kind = kind.lower()
    except Exception:
        kind = ""
    if "v6" in kind or "trillium" in kind:
        max_rows, vmem_limit, n_tc = 4096, 48 << 20, 1
    if "v7" in kind:
        max_rows, vmem_limit, n_tc = 8192, 48 << 20, 2
    return max_rows, vmem_limit, n_tc


def model_forward(x):
    """Forward pass of the Model. x: float32 array of any shape."""
    orig_shape = x.shape
    total = x.size

    max_tile_rows, vmem_limit, n_tc = _tpu_generation_params()

    # Flatten and pad so the 2-D view is (rows, 128) with rows % 8 == 0.
    flat = x.reshape(-1)
    padded_total = _round_up(total, _SUBLANES * _LANES)
    if padded_total != total:
        flat = jnp.pad(flat, (0, padded_total - total))
    rows = padded_total // _LANES
    x2d = flat.reshape(rows, _LANES)

    # cdiv-based tiling: big lane-dense tiles, ragged last block masked.
    tile_rows = min(rows, max_tile_rows)
    if n_tc > 1 and rows > 2 * _SUBLANES:
        # Keep at least 2 parallel blocks so both TensorCores get work.
        half = _round_up(-(-rows // 2), _SUBLANES)
        tile_rows = min(tile_rows, half)
    tile_rows = max(_SUBLANES, _round_up(tile_rows, _SUBLANES))
    grid = pl.cdiv(rows, tile_rows)

    cp_kwargs = dict(dimension_semantics=("parallel",))
    if vmem_limit is not None:
        cp_kwargs["vmem_limit_bytes"] = vmem_limit

    out2d = pl.pallas_call(
        _model_kernel,
        out_shape=jax.ShapeDtypeStruct((rows, _LANES), x.dtype),
        grid_spec=pl.GridSpec(
            grid=(grid,),
            in_specs=[pl.BlockSpec((tile_rows, _LANES), lambda i: (i, 0))],
            out_specs=pl.BlockSpec((tile_rows, _LANES), lambda i: (i, 0)),
        ),
        compiler_params=pltpu.CompilerParams(**cp_kwargs),
    )(x2d)

    out = out2d.reshape(-1)
    if padded_total != total:
        out = out[:total]
    return out.reshape(orig_shape)


def _reference(x):
    v1 = x + x
    v2 = v1 + 3.0
    v3 = jnp.maximum(v2, 0.0)
    v4 = jnp.minimum(v3, 6.0)
    v5 = v1 * v4
    v6 = v5 / 6.0
    return jnp.clip(v6, 0.0, 6.0)


if __name__ == "__main__":
    key = jax.random.PRNGKey(0)
    # NCHW input consistent with the elementwise module.
    x = jax.random.normal(key, (2, 4, 16, 16), dtype=jnp.float32) * 4.0

    out = model_forward(x)
    out = jax.block_until_ready(out)

    ref = _reference(x)
    assert out.shape == x.shape and out.dtype == x.dtype
    assert jnp.allclose(out, ref, atol=1e-5, rtol=1e-5), "mismatch vs reference"

    print("KERNEL_OK")
</pallas_src>

<mosaic_0001>
module attributes {stable_mosaic.version = 11 : i64} {
  func.func @_model_kernel(%arg0: i32, %arg1: memref<16x128xf32, #tpu.memory_space<vmem>>, %arg2: memref<16x128xf32, #tpu.memory_space<vmem>>) attributes {dimension_semantics = [#tpu.dimension_semantics<parallel>], iteration_bounds = array<i64: 1>, scalar_prefetch = 0 : i64, scratch_operands = 0 : i64, tpu.core_type = #tpu.core_type<tc>, window_params = [{transform_indices = @transform_0, window_bounds = array<i64: 16, 128>}, {transform_indices = @transform_1, window_bounds = array<i64: 16, 128>}]} {
    %c0 = arith.constant 0 : index
    %c0_0 = arith.constant 0 : index
    %0 = vector.load %arg1[%c0, %c0_0] : memref<16x128xf32, #tpu.memory_space<vmem>>, vector<16x128xf32>
    %1 = arith.addf %0, %0 : vector<16x128xf32>
    %cst = arith.constant 3.000000e+00 : f32
    %2 = vector.broadcast %cst : f32 to vector<16x128xf32>
    %3 = arith.addf %1, %2 : vector<16x128xf32>
    %cst_1 = arith.constant 0.000000e+00 : f32
    %cst_2 = arith.constant 6.000000e+00 : f32
    %4 = vector.broadcast %cst_1 : f32 to vector<16x128xf32>
    %5 = arith.maximumf %4, %3 : vector<16x128xf32>
    %6 = vector.broadcast %cst_2 : f32 to vector<16x128xf32>
    %7 = arith.minimumf %6, %5 : vector<16x128xf32>
    %8 = arith.mulf %1, %7 : vector<16x128xf32>
    %cst_3 = arith.constant 6.000000e+00 : f32
    %9 = vector.broadcast %cst_3 : f32 to vector<16x128xf32>
    %10 = arith.divf %8, %9 : vector<16x128xf32>
    %cst_4 = arith.constant 0.000000e+00 : f32
    %cst_5 = arith.constant 6.000000e+00 : f32
    %11 = vector.broadcast %cst_4 : f32 to vector<16x128xf32>
    %12 = arith.maximumf %11, %10 : vector<16x128xf32>
    %13 = vector.broadcast %cst_5 : f32 to vector<16x128xf32>
    %14 = arith.minimumf %13, %12 : vector<16x128xf32>
    %c0_6 = arith.constant 0 : index
    %c0_7 = arith.constant 0 : index
    %15 = vector.load %arg2[%c0_6, %c0_7] : memref<16x128xf32, #tpu.memory_space<vmem>>, vector<16x128xf32>
    tpu.vector_store %arg2[%c0_6, %c0_7], %14 {strides = array<i32>} : memref<16x128xf32, #tpu.memory_space<vmem>>, vector<16x128xf32>,
    return
  }
  func.func @transform_0(%arg0: i32) -> (i32, i32) {
    %c0_i32 = arith.constant 0 : i32
    %c0_i32_0 = arith.constant 0 : i32
    return %arg0, %c0_i32 : i32, i32
  }
  func.func @transform_1(%arg0: i32) -> (i32, i32) {
    %c0_i32 = arith.constant 0 : i32
    %c0_i32_0 = arith.constant 0 : i32
    return %arg0, %c0_i32 : i32, i32
  }
}

</mosaic_0001>

<bundles_post_ra>
// kernel: tpu_custom_call.1
= control target key start
LH: loop header
LB: loop body
LE: loop exit
PB: predicated region body
PF: predicated region fallthrough
CT: control target
= control target key end

     0   :  { %6 = vsyncpa [#allocation3], 0  ;;  %s135_s0 = inlined_call_operand.hbm [shape: f32[16,128], index: 0, kind: input, shape index: {}]   ;;  %s136_s1 = inlined_call_operand.hbm [shape: f32[16,128], index: 1, kind: output, shape index: {}]  }
   0x1   :  { %7 = vsyncpa [#allocation4], 0  ;;  %s109_s6 = smov [#allocation2]  }
   0x2   :  { %s13_s7 = sshll.u32 %s109_s6, 4  ;;  %s14_s7 = int_to_ptr.vmem [resolvable:$true] %s13_s7 }
   0x3   :  { %s73_s8 = scalar_lea.vmem %s14_s7, 256  ;;  %p78_p1 = scmp.lt.s32.totalorder %s14_s7, %s14_s7 }
   0x4   :  { %p74_p0 = scmp.ne.s32.totalorder %s14_s7, %s73_s8  ;;  %p79_p2 = scmp.lt.s32.totalorder %s73_s8, %s73_s8 }
   0x6   :  { %p80_p3 = por %p79_p2, %p78_p1 }
   0x8   :  { %p81_p4 = pnand %p80_p3, %p74_p0 }
   0xa   :  { %84 = shalt.err (!%p81_p4)
}
   0xb   :  { %s110_s9 = smov 128   ;;  %s111_s10 = smov 8  }
   0xc   :  { %19 = dma.hbm_to_vmem [thread:$0]  %s135_s0, 256, %s14_s7, [#allocation3], %s110_s9, %s110_s9, %s111_s10  }
   0xd   :  { %105 = dma.done.wait [#allocation3], 256  }
   0xe   :  { %106 = vsyncadd [#allocation3], 4294967040  ;;  %v23_v0 = vld [vmem:[#allocation2] sm:$0xff]  ;;  %v24_v1 = vld [vmem:[#allocation2 + $0x8] sm:$0xff]  ;;  %s112_s13 = smov [#allocation5]  }
   0xf   :  { %v25_v2 = vadd.f32 %v23_v0, %v23_v0  ;;  %v26_v3 = vadd.f32 %v24_v1, %v24_v1  ;;  %s49_s14 = sshll.u32 %s112_s13, 4  ;;  %s50_s14 = int_to_ptr.vmem [resolvable:$true] %s49_s14 }
  0x10   :  { %s85_s0 = scalar_lea.vmem %s50_s14, 256  ;;  %p90_p6 = scmp.lt.s32.totalorder %s50_s14, %s50_s14 }
  0x11   :  { %v27_v4 = vadd.f32 3.0, %v25_v2  ;;  %v28_v5 = vadd.f32 3.0, %v26_v3  ;;  %p86_p5 = scmp.ne.s32.totalorder %s50_s14, %s85_s0  ;;  %p91_p7 = scmp.lt.s32.totalorder %s85_s0, %s85_s0 }
  0x13   :  { %v29_v6 = vmax.f32 %v27_v4, 0.0  ;;  %v30_v7 = vmax.f32 %v28_v5, 0.0  ;;  %p92_p8 = por %p91_p7, %p90_p6 }
  0x15   :  { %v31_v8 = vmin.f32 %v29_v6, 6.0  ;;  %v32_v9 = vmin.f32 %v30_v7, 6.0  ;;  %p93_p9 = pnand %p92_p8, %p86_p5 }
  0x17   :  { %v33_v10 = vmul.f32 %v31_v8, %v25_v2  ;;  %v34_v11 = vmul.f32 %v32_v9, %v26_v3 }
  0x19   :  { %v36_v12 = vmul.f32 0.16666667, %v33_v10  ;;  %v37_v13 = vmul.f32 0.16666667, %v34_v11 }
  0x1b   :  { %v38_v14 = vmax.f32 %v36_v12, 0.0  ;;  %v39_v15 = vmax.f32 %v37_v13, 0.0 }
  0x1d   :  { %v40_v16 = vmin.f32 %v38_v14, 6.0  ;;  %v41_v17 = vmin.f32 %v39_v15, 6.0 }
  0x1f   :  { %42 = vst [vmem:[#allocation5] sm:$0xff] %v40_v16  ;;  %43 = vst [vmem:[#allocation5 + $0x8] sm:$0xff] %v41_v17 }
  0x20   :  { %96 = shalt.err (!%p93_p9)
}
  0x21   :  { %55 = dma.vmem_to_hbm [thread:$0]  %s50_s14, 256, %s136_s1, [#allocation4], %s110_s9, %s110_s9, %s111_s10  }
  0x22   :  { %107 = dma.done.wait [#allocation4], 256  }
  0x23   :  { %108 = vsyncadd [#allocation4], 4294967040 }
  0x24   :  { %59 = vsyncpa [#allocation3], 1 }
  0x25   :  { %60 = vsyncpa [#allocation4], 1 }

</bundles_post_ra>
